<compile_context>
chip_gen: v7x
topology: tpu7x:2x2x1
jax: 0.10.0
libtpu: 0.0.40
codegen_flags: <defaults>
</compile_context>

<pallas_src>
import functools

import jax
import jax.numpy as jnp
from jax.experimental import pallas as pl
from jax.experimental.pallas import tpu as pltpu


def _round_up(x, m):
    return ((x + m - 1) // m) * m


# ----------------------------------------------------------------------------
# Pallas kernel 1: tiled matmul, bf16 operands, f32 accumulate, fused bias
# (and optional fused residual add) — used for every conv via im2col.
# ----------------------------------------------------------------------------
def _matmul_kernel(a_ref, b_ref, bias_ref, o_ref, acc_ref):
    @pl.when(pl.program_id(2) == 0)
    def _():
        acc_ref[...] = jnp.zeros_like(acc_ref)

    acc_ref[...] += jnp.dot(a_ref[...], b_ref[...],
                            preferred_element_type=jnp.float32)

    @pl.when(pl.program_id(2) == pl.num_programs(2) - 1)
    def _():
        o_ref[...] = (acc_ref[...] + bias_ref[...]).astype(o_ref.dtype)


def _matmul_res_kernel(a_ref, b_ref, bias_ref, r_ref, o_ref, acc_ref):
    @pl.when(pl.program_id(2) == 0)
    def _():
        acc_ref[...] = jnp.zeros_like(acc_ref)

    acc_ref[...] += jnp.dot(a_ref[...], b_ref[...],
                            preferred_element_type=jnp.float32)

    @pl.when(pl.program_id(2) == pl.num_programs(2) - 1)
    def _():
        o_ref[...] = (acc_ref[...] + bias_ref[...] + r_ref[...]).astype(o_ref.dtype)


def matmul_bias(a, b, bias, residual=None):
    """out = a @ b + bias (+ residual).  a:(M,K) bf16, b:(K,N) bf16, bias f32."""
    M, K = a.shape
    N = b.shape[1]

    # Tile selection (feedback: large tiles, TN = full padded Cout).
    Mp0 = _round_up(M, 8)
    TM = min(512, Mp0)
    Mp = _round_up(M, TM)

    Np = _round_up(N, 128)
    TN = Np if Np <= 512 else next(t for t in (512, 384, 256, 128) if Np % t == 0)

    Kp = _round_up(K, 128)
    if Kp <= 1280:
        TK = Kp
    else:
        TK = next((t for t in (1152, 1024, 896, 768, 640, 512) if Kp % t == 0), 512)
        Kp = _round_up(Kp, TK)

    a_p = a if (Mp == M and Kp == K) else jnp.pad(a, ((0, Mp - M), (0, Kp - K)))
    b_p = b if (Kp == K and Np == N) else jnp.pad(b, ((0, Kp - K), (0, Np - N)))
    bias_p = jnp.pad(bias.astype(jnp.float32), ((0, Np - N),)).reshape(1, Np)

    in_specs = [
        pl.BlockSpec((TM, TK), lambda i, j, k: (i, k)),
        pl.BlockSpec((TK, TN), lambda i, j, k: (k, j)),
        pl.BlockSpec((1, TN), lambda i, j, k: (0, j)),
    ]
    args = [a_p, b_p, bias_p]
    kernel = _matmul_kernel
    if residual is not None:
        r = residual.astype(jnp.float32)
        r_p = r if (Mp == M and Np == N) else jnp.pad(
            r, ((0, Mp - M), (0, Np - N)))
        in_specs.append(pl.BlockSpec((TM, TN), lambda i, j, k: (i, j)))
        args.append(r_p)
        kernel = _matmul_res_kernel

    out = pl.pallas_call(
        kernel,
        out_shape=jax.ShapeDtypeStruct((Mp, Np), jnp.float32),
        grid_spec=pltpu.PrefetchScalarGridSpec(
            num_scalar_prefetch=0,
            grid=(Mp // TM, Np // TN, Kp // TK),
            in_specs=in_specs,
            out_specs=pl.BlockSpec((TM, TN), lambda i, j, k: (i, j)),
            scratch_shapes=[pltpu.VMEM((TM, TN), jnp.float32)],
        ),
        compiler_params=pltpu.CompilerParams(
            dimension_semantics=("parallel", "parallel", "arbitrary"),
            vmem_limit_bytes=32 * 1024 * 1024),
    )(*args)
    if Mp != M or Np != N:
        out = out[:M, :N]
    return out


# ----------------------------------------------------------------------------
# Pallas kernels 2+3: GroupNorm (+ optional fused SiLU), channels-last.
#   pass A: row-tiled per-channel sum / sum-of-squares reduction
#   pass B: per-channel scale/shift + SiLU apply (lane-dense, C in lanes)
# ----------------------------------------------------------------------------
def _gn_stats_kernel(x_ref, sum_out, sq_out, sum_ref, sq_ref):
    @pl.when(pl.program_id(1) == 0)
    def _():
        sum_ref[...] = jnp.zeros_like(sum_ref)
        sq_ref[...] = jnp.zeros_like(sq_ref)

    x = x_ref[0].astype(jnp.float32)                       # (TS, C)
    sum_ref[...] += jnp.sum(x, axis=0, keepdims=True)      # (1, C)
    sq_ref[...] += jnp.sum(x * x, axis=0, keepdims=True)   # (1, C)

    @pl.when(pl.program_id(1) == pl.num_programs(1) - 1)
    def _():
        sum_out[0] = sum_ref[...]
        sq_out[0] = sq_ref[...]


def _gn_apply_kernel(x_ref, sc_ref, sh_ref, o_ref, *, apply_silu):
    x = x_ref[0].astype(jnp.float32)                       # (TS, C)
    y = x * sc_ref[0] + sh_ref[0]                          # (1, C) broadcast
    if apply_silu:
        y = y * jax.nn.sigmoid(y)
    o_ref[0] = y.astype(o_ref.dtype)


def _pick_row_tile(S):
    for ts in (1024, 512, 256, 128, 64, 32, 16, 8):
        if S % ts == 0:
            return ts
    return S  # tiny / odd S: single full block (always a legal block shape)


@functools.partial(jax.jit, static_argnames=("groups", "eps", "apply_silu"))
def group_norm_silu(x, gamma, beta, groups, eps=1e-6, apply_silu=False):
    """GroupNorm (+ optional SiLU) on channels-last x: (N, T, H, W, C)."""
    N, T, H, W, C = x.shape
    G = groups
    Cg = C // G
    S = T * H * W
    xr = x.reshape(N, S, C)
    TS = _pick_row_tile(S)
    nS = S // TS

    sums, sqs = pl.pallas_call(
        _gn_stats_kernel,
        out_shape=(jax.ShapeDtypeStruct((N, 1, C), jnp.float32),
                   jax.ShapeDtypeStruct((N, 1, C), jnp.float32)),
        grid_spec=pltpu.PrefetchScalarGridSpec(
            num_scalar_prefetch=0,
            grid=(N, nS),
            in_specs=[pl.BlockSpec((1, TS, C), lambda n, s: (n, s, 0))],
            out_specs=(pl.BlockSpec((1, 1, C), lambda n, s: (n, 0, 0)),
                       pl.BlockSpec((1, 1, C), lambda n, s: (n, 0, 0))),
            scratch_shapes=[pltpu.VMEM((1, C), jnp.float32),
                            pltpu.VMEM((1, C), jnp.float32)],
        ),
        compiler_params=pltpu.CompilerParams(
            dimension_semantics=("parallel", "arbitrary")),
    )(xr)

    # Tiny per-group reduction + affine folding in plain JAX (N*C elements).
    cnt = jnp.float32(S * Cg)
    gsum = sums.reshape(N, G, Cg).sum(axis=-1)              # (N, G)
    gsq = sqs.reshape(N, G, Cg).sum(axis=-1)                # (N, G)
    mean = gsum / cnt
    var = jnp.maximum(gsq / cnt - mean * mean, 0.0)
    rstd = jax.lax.rsqrt(var + jnp.float32(eps))            # (N, G)
    g2 = gamma.reshape(1, G, Cg).astype(jnp.float32)
    b2 = beta.reshape(1, G, Cg).astype(jnp.float32)
    scale = (g2 * rstd[:, :, None]).reshape(N, 1, C)
    shift = (b2 - g2 * (mean * rstd)[:, :, None]).reshape(N, 1, C)

    out = pl.pallas_call(
        functools.partial(_gn_apply_kernel, apply_silu=apply_silu),
        out_shape=jax.ShapeDtypeStruct((N, S, C), jnp.float32),
        grid_spec=pltpu.PrefetchScalarGridSpec(
            num_scalar_prefetch=0,
            grid=(N, nS),
            in_specs=[
                pl.BlockSpec((1, TS, C), lambda n, s: (n, s, 0)),
                pl.BlockSpec((1, 1, C), lambda n, s: (n, 0, 0)),
                pl.BlockSpec((1, 1, C), lambda n, s: (n, 0, 0)),
            ],
            out_specs=pl.BlockSpec((1, TS, C), lambda n, s: (n, s, 0)),
        ),
        compiler_params=pltpu.CompilerParams(
            dimension_semantics=("parallel", "parallel")),
    )(xr, scale, shift)
    return out.reshape(N, T, H, W, C)


# ----------------------------------------------------------------------------
# Conv wrappers (channels-last, im2col built by lane-axis concat, no transposes)
# ----------------------------------------------------------------------------
@jax.jit
def cached_conv3d(x, w, b, residual=None):
    """CachedConv3d.forward (empty cache): replicate first frame twice along T,
    then Conv3d(k=3, stride=1, padding=(0,1,1)).  x channels-last (N,T,H,W,C).
    Optional residual (N,T,H,W,Cout) is added in the matmul epilogue."""
    N, T, H, W, C = x.shape
    Cout = w.shape[0]
    xt = jnp.concatenate([x[:, :1], x[:, :1], x], axis=1)          # (N,T+2,H,W,C)
    xp = jnp.pad(xt, ((0, 0), (0, 0), (1, 1), (1, 1), (0, 0)))
    patches = [xp[:, kt:kt + T, kh:kh + H, kw:kw + W, :]
               for kt in range(3) for kh in range(3) for kw in range(3)]
    a = jnp.concatenate(patches, axis=-1).reshape(N * T * H * W, 27 * C)
    a = a.astype(jnp.bfloat16)
    wm = jnp.transpose(w, (2, 3, 4, 1, 0)).reshape(27 * C, Cout).astype(jnp.bfloat16)
    r = None if residual is None else residual.reshape(N * T * H * W, Cout)
    out = matmul_bias(a, wm, b, residual=r)
    return out.reshape(N, T, H, W, Cout)


@jax.jit
def conv3d_1x1(x, w, b):
    N, T, H, W, C = x.shape
    Cout = w.shape[0]
    a = x.reshape(N * T * H * W, C).astype(jnp.bfloat16)
    wm = w.reshape(Cout, C).T.astype(jnp.bfloat16)
    out = matmul_bias(a, wm, b)
    return out.reshape(N, T, H, W, Cout)


@functools.partial(jax.jit, static_argnames=("compress_time",))
def downsample3d(x, w, b, compress_time):
    """Downsample3D: optional temporal avg-pool(2), F.pad(0,1,0,1), then
    Conv2d(k=3, stride=2, padding=0) applied per frame.  Channels-last."""
    N, T, H, W, C = x.shape
    if compress_time:
        if T % 2 == 1:
            x_first = x[:, :1]
            x_rest = x[:, 1:]
            if x_rest.shape[1] > 0:
                x_rest = x_rest.reshape(N, (T - 1) // 2, 2, H, W, C).mean(axis=2)
                x = jnp.concatenate([x_first, x_rest], axis=1)
            else:
                x = x_first
        else:
            x = x.reshape(N, T // 2, 2, H, W, C).mean(axis=2)
    N, T2, H, W, C = x.shape
    xp = jnp.pad(x, ((0, 0), (0, 0), (0, 1), (0, 1), (0, 0)))     # pad H/W right
    Ho = (H + 1 - 3) // 2 + 1
    Wo = (W + 1 - 3) // 2 + 1
    Cout = w.shape[0]
    patches = [xp[:, :, kh:kh + 2 * (Ho - 1) + 1:2, kw:kw + 2 * (Wo - 1) + 1:2, :]
               for kh in range(3) for kw in range(3)]
    a = jnp.concatenate(patches, axis=-1).reshape(N * T2 * Ho * Wo, 9 * C)
    a = a.astype(jnp.bfloat16)
    wm = jnp.transpose(w, (2, 3, 1, 0)).reshape(9 * C, Cout).astype(jnp.bfloat16)
    out = matmul_bias(a, wm, b)
    return out.reshape(N, T2, Ho, Wo, Cout)


# ----------------------------------------------------------------------------
# Module blocks
# ----------------------------------------------------------------------------
def resnet3d_block(x, bp):
    if "conv_shortcut.weight" in bp:
        residual = conv3d_1x1(x, bp["conv_shortcut.weight"],
                              bp["conv_shortcut.bias"])
    else:
        residual = x
    h = group_norm_silu(x, bp["norm1.weight"], bp["norm1.bias"], groups=32,
                        eps=1e-6, apply_silu=True)
    h = cached_conv3d(h, bp["conv1.weight"], bp["conv1.bias"])
    h = group_norm_silu(h, bp["norm2.weight"], bp["norm2.bias"], groups=32,
                        eps=1e-6, apply_silu=True)
    # Residual add fused into the conv2 matmul epilogue.
    h = cached_conv3d(h, bp["conv2.weight"], bp["conv2.bias"], residual=residual)
    return h


BLOCK_CFGS = [
    ("res", 128, 128), ("res", 128, 128), ("res", 128, 128),
    ("down", 128, 128, True),
    ("res", 128, 256), ("res", 256, 256), ("res", 256, 256),
    ("down", 256, 256, True),
    ("res", 256, 256), ("res", 256, 256), ("res", 256, 256),
    ("down", 256, 256, False),
    ("res", 256, 512), ("res", 512, 512), ("res", 512, 512),
    ("res", 512, 512), ("res", 512, 512),
]


def cog_vae_encoder(sample, params):
    # sample: (N, C, T, H, W) float32 (PyTorch NCDHW layout)
    x = jnp.transpose(sample, (0, 2, 3, 4, 1))        # -> channels-last
    h = cached_conv3d(x, params["conv_in.weight"], params["conv_in.bias"])
    for i, cfg in enumerate(BLOCK_CFGS):
        bp = params["blocks"][i]
        if cfg[0] == "res":
            h = resnet3d_block(h, bp)
        else:
            h = downsample3d(h, bp["conv.weight"], bp["conv.bias"],
                             compress_time=cfg[3])
    h = group_norm_silu(h, params["norm_out.weight"], params["norm_out.bias"],
                        groups=32, eps=1e-6, apply_silu=True)  # norm_out + conv_act
    h = cached_conv3d(h, params["conv_out.weight"], params["conv_out.bias"])
    h = h[..., :16] * 0.7                             # latent channels + scaling
    return jnp.transpose(h, (0, 4, 1, 2, 3))          # back to NCDHW


# ----------------------------------------------------------------------------
# Deterministic parameter init (synthetic weights; shapes from __init__)
# ----------------------------------------------------------------------------
def init_params(key):
    counter = [0]

    def nxt():
        counter[0] += 1
        return jax.random.fold_in(key, counter[0])

    def conv_w(shape):
        fan_in = 1
        for d in shape[1:]:
            fan_in *= d
        return jax.random.normal(nxt(), shape, jnp.float32) / jnp.sqrt(
            jnp.float32(fan_in))

    def conv_b(n):
        return 0.01 * jax.random.normal(nxt(), (n,), jnp.float32)

    params = {
        "conv_in.weight": conv_w((128, 3, 3, 3, 3)),
        "conv_in.bias": conv_b(128),
        "norm_out.weight": jnp.ones((512,), jnp.float32),
        "norm_out.bias": jnp.zeros((512,), jnp.float32),
        "conv_out.weight": conv_w((32, 512, 3, 3, 3)),
        "conv_out.bias": conv_b(32),
        "blocks": [],
    }
    for cfg in BLOCK_CFGS:
        if cfg[0] == "res":
            cin, cout = cfg[1], cfg[2]
            bp = {
                "norm1.weight": jnp.ones((cin,), jnp.float32),
                "norm1.bias": jnp.zeros((cin,), jnp.float32),
                "norm2.weight": jnp.ones((cout,), jnp.float32),
                "norm2.bias": jnp.zeros((cout,), jnp.float32),
                "conv1.weight": conv_w((cout, cin, 3, 3, 3)),
                "conv1.bias": conv_b(cout),
                "conv2.weight": conv_w((cout, cout, 3, 3, 3)),
                "conv2.bias": conv_b(cout),
            }
            if cin != cout:
                bp["conv_shortcut.weight"] = conv_w((cout, cin, 1, 1, 1))
                bp["conv_shortcut.bias"] = conv_b(cout)
        else:
            cin, cout = cfg[1], cfg[2]
            bp = {
                "conv.weight": conv_w((cout, cin, 3, 3)),
                "conv.bias": conv_b(cout),
            }
        params["blocks"].append(bp)
    return params


if __name__ == "__main__":
    key = jax.random.PRNGKey(0)
    params = init_params(key)
    # sample: (N, C=3, T, H, W) — small video clip
    sample = jax.random.normal(jax.random.fold_in(key, 12345),
                               (1, 3, 4, 16, 16), jnp.float32)
    out = cog_vae_encoder(sample, params)
    out = jax.block_until_ready(out)
    expected = (1, 16, 1, 2, 2)  # 16 latent channels, T/4-ish, H/8, W/8
    assert out.shape == expected, (out.shape, expected)
    assert bool(jnp.all(jnp.isfinite(out)))
    print("KERNEL_OK")
</pallas_src>

<mosaic_0001>
module attributes {stable_mosaic.version = 11 : i64} {
  func.func @_matmul_kernel(%arg0: i32, %arg1: i32, %arg2: i32, %arg3: memref<512x128xbf16, #tpu.memory_space<vmem>>, %arg4: memref<128x128xbf16, #tpu.memory_space<vmem>>, %arg5: memref<1x128xf32, #tpu.memory_space<vmem>>, %arg6: memref<512x128xf32, #tpu.memory_space<vmem>>, %arg7: memref<512x128xf32, #tpu.memory_space<vmem>>) attributes {dimension_semantics = [#tpu.dimension_semantics<parallel>, #tpu.dimension_semantics<parallel>, #tpu.dimension_semantics<arbitrary>], iteration_bounds = array<i64: 2, 1, 1>, scalar_prefetch = 0 : i64, scratch_operands = 1 : i64, tpu.core_type = #tpu.core_type<tc>, window_params = [{transform_indices = @transform_0, window_bounds = array<i64: 512, 128>}, {transform_indices = @transform_1, window_bounds = array<i64: 128, 128>}, {transform_indices = @transform_2, window_bounds = array<i64: 1, 128>}, {transform_indices = @transform_3, window_bounds = array<i64: 512, 128>}]} {
    %c0_i32 = arith.constant 0 : i32
    %0 = arith.cmpi eq, %arg2, %c0_i32 : i32
    %1 = arith.extui %0 : i1 to i32
    %c0_i32_0 = arith.constant 0 : i32
    %2 = arith.cmpi ne, %1, %c0_i32_0 : i32
    scf.if %2 {
      %cst_10 = arith.constant 0.000000e+00 : f32
      %12 = vector.broadcast %cst_10 : f32 to vector<512x128xf32>
      %c0_11 = arith.constant 0 : index
      %c0_12 = arith.constant 0 : index
      %13 = vector.load %arg7[%c0_11, %c0_12] : memref<512x128xf32, #tpu.memory_space<vmem>>, vector<512x128xf32>
      tpu.vector_store %arg7[%c0_11, %c0_12], %12 {strides = array<i32>} : memref<512x128xf32, #tpu.memory_space<vmem>>, vector<512x128xf32>,
    } else {
    }
    %c0 = arith.constant 0 : index
    %c0_1 = arith.constant 0 : index
    %3 = vector.load %arg7[%c0, %c0_1] : memref<512x128xf32, #tpu.memory_space<vmem>>, vector<512x128xf32>
    %c0_2 = arith.constant 0 : index
    %c0_3 = arith.constant 0 : index
    %4 = vector.load %arg3[%c0_2, %c0_3] : memref<512x128xbf16, #tpu.memory_space<vmem>>, vector<512x128xbf16>
    %c0_4 = arith.constant 0 : index
    %c0_5 = arith.constant 0 : index
    %5 = vector.load %arg4[%c0_4, %c0_5] : memref<128x128xbf16, #tpu.memory_space<vmem>>, vector<128x128xbf16>
    %cst = arith.constant dense<0.000000e+00> : vector<512x128xf32>
    %6 = tpu.matmul %4, %5, %cst {dimension_numbers = #tpu.dot_dimension_numbers<[1], [0], [0], [1], [0, 0, 1, 1], [], []>} : vector<512x128xbf16>, vector<128x128xbf16>, vector<512x128xf32> -> vector<512x128xf32>
    %7 = arith.addf %3, %6 : vector<512x128xf32>
    %c0_6 = arith.constant 0 : index
    %c0_7 = arith.constant 0 : index
    %8 = vector.load %arg7[%c0_6, %c0_7] : memref<512x128xf32, #tpu.memory_space<vmem>>, vector<512x128xf32>
    tpu.vector_store %arg7[%c0_6, %c0_7], %7 {strides = array<i32>} : memref<512x128xf32, #tpu.memory_space<vmem>>, vector<512x128xf32>,
    %c0_i32_8 = arith.constant 0 : i32
    %9 = arith.cmpi eq, %arg2, %c0_i32_8 : i32
    %10 = arith.extui %9 : i1 to i32
    %c0_i32_9 = arith.constant 0 : i32
    %11 = arith.cmpi ne, %10, %c0_i32_9 : i32
    scf.if %11 {
      %c0_10 = arith.constant 0 : index
      %c0_11 = arith.constant 0 : index
      %12 = vector.load %arg7[%c0_10, %c0_11] : memref<512x128xf32, #tpu.memory_space<vmem>>, vector<512x128xf32>
      %c0_12 = arith.constant 0 : index
      %c0_13 = arith.constant 0 : index
      %13 = vector.load %arg5[%c0_12, %c0_13] : memref<1x128xf32, #tpu.memory_space<vmem>>, vector<1x128xf32>
      %14 = vector.broadcast %13 : vector<1x128xf32> to vector<512x128xf32>
      %15 = arith.addf %12, %14 : vector<512x128xf32>
      %c0_14 = arith.constant 0 : index
      %c0_15 = arith.constant 0 : index
      %16 = vector.load %arg6[%c0_14, %c0_15] : memref<512x128xf32, #tpu.memory_space<vmem>>, vector<512x128xf32>
      tpu.vector_store %arg6[%c0_14, %c0_15], %15 {strides = array<i32>} : memref<512x128xf32, #tpu.memory_space<vmem>>, vector<512x128xf32>,
    } else {
    }
    return
  }
  func.func @transform_0(%arg0: i32, %arg1: i32, %arg2: i32) -> (i32, i32) {
    %c0_i32 = arith.constant 0 : i32
    return %arg0, %arg2 : i32, i32
  }
  func.func @transform_1(%arg0: i32, %arg1: i32, %arg2: i32) -> (i32, i32) {
    %c0_i32 = arith.constant 0 : i32
    return %arg2, %arg1 : i32, i32
  }
  func.func @transform_2(%arg0: i32, %arg1: i32, %arg2: i32) -> (i32, i32) {
    %c0_i32 = arith.constant 0 : i32
    %c0_i32_0 = arith.constant 0 : i32
    return %c0_i32, %arg1 : i32, i32
  }
  func.func @transform_3(%arg0: i32, %arg1: i32, %arg2: i32) -> (i32, i32) {
    %c0_i32 = arith.constant 0 : i32
    return %arg0, %arg1 : i32, i32
  }
}

</mosaic_0001>

<bundles_post_ra>
// kernel: cached_conv3d.1
= control target key start
LH: loop header
LB: loop body
LE: loop exit
PB: predicated region body
PF: predicated region fallthrough
CT: control target
= control target key end

     0   :  { %8 = vsyncpa [#allocation4], 0  ;;  %s2151_s0 = inlined_call_operand.vmem [shape: bf16[1024,128], index: 0, kind: input, shape index: {}]   ;;  %s2152_s1 = inlined_call_operand.vmem [shape: bf16[128,128], index: 1, kind: input, shape index: {}]   ;;  %s2153_s2 = inlined_call_operand.vmem [shape: f32[1,128], index: 2, kind: input, shape index: {}]   ;;  %s2154_s3 = inlined_call_operand.hbm [shape: f32[1024,128], index: 3, kind: output, shape index: {}]  }
   0x1   :  { %10 = vsyncpa [#allocation4 + $0x1], 0  ;;  %s1839_s12 = smov 0   ;;  %s1841_s13 = smov 0  }
   0x2   :  { %s1843_s14 = smov 0   ;;  %s1845_s15 = smov 0  }
   0x3   :  { %s1847_s16 = smov 0   ;;  %s1849_s17 = smov 0  }
   0x4 LB: > { %s1446_s18 = sadd.s32 4294967295, %s1814_s17   ;;  %s1447_s19 = sadd.s32 4294967294, %s1814_s17   ;;  %s1814_s17 = sphi %s1849_s17, %s16_s17   ;;  %s1810_s16 = sphi %s1847_s16, %s2161_s16   ;;  %s1806_s15 = sphi %s1845_s15, %s2160_s15   ;;  %s1802_s14 = sphi %s1843_s14, %s2159_s14   ;;  %s1798_s13 = sphi %s1841_s13, %s2158_s13   ;;  %s1794_s12 = sphi %s1839_s12, %s2157_s12  }
   0x5   : > { %s35_s20 = sadd.s32 1, %s1810_s16  ;;  %s126_s21 = sadd.s32 1, %s1802_s14 }
   0x6   : > { %p37_p0 = scmp.ge.s32.totalorder %s35_s20, 2  ;;  %p136_p1 = scmp.ne.s32.totalorder %s1802_s14, %s1798_s13 }
   0x7   : > { %p137_p2 = scmp.eq.s32.totalorder %s1446_s18, 1  ;;  %p142_p3 = scmp.ne.s32.totalorder %s1798_s13, %s1794_s12 }
   0x8   : > { %s2163_s20 = smov (%p37_p0, %s35_s20), 0  ;;  %p143_p5 = scmp.eq.s32.totalorder %s1447_s19, 1 }
   0x9   : > { %p1879_p4 = por %p137_p2, %p136_p1  ;;  %s121_s23 = ssub.s32 %s1810_s16, %s2163_s20 }
   0xa   : > { %p1452_p6 = scmp.ge.s32.totalorder %s1814_s17, 1  ;;  %p124_p7 = scmp.eq.s32.totalorder %s121_s23, 0 }
   0xb   : > { %p1886_p8 = por %p143_p5, %p142_p3  ;;  %p191_p9 = scmp.lt.s32.totalorder %s1814_s17, 3 }
   0xc   : > { %s1892_s25 = scalar_select %p124_p7, %s1802_s14, %s126_s21  }
   0xd   : > { %p192_p10 = pnand %p1452_p6, %p191_p9 }
   0xe   : > { %v1696_v0 = vld [vmem:[%s2152_s1] sm:$0xff] (!%p192_p10)   ;;  %s1454_s28 = sshll.u32 (!%p192_p10), %s1806_s15, 6  ;;  %v1697_v1 = vld [vmem:[%s2152_s1 + $0x8] sm:$0xff] (!%p192_p10)   ;;  %v1698_v2 = vld [vmem:[%s2152_s1 + $0x10] sm:$0xff] (!%p192_p10)   ;;  %s226_s30 = sand.u32 (!%p192_p10), 1, %s1798_s13  }
   0xf   : > { %195 = sbr.rel (%p192_p10) target bundleno = 335 (0x14f), region = 32  ;;  %p230_p11 = scmp.lt.s32.totalorder (!%p192_p10), %s1454_s28, 127  ;;  %1543 = vmatprep.subr.bf16.mxu0 (!%p192_p10), %v1696_v0  ;;  %1623 = vmatprep.subr.bf16.mxu1 (!%p192_p10), %v1696_v0  ;;  %v1699_v3 = vld [vmem:[%s2152_s1 + $0x18] sm:$0xff] (!%p192_p10)   ;;  %v1700_v6 = vld [vmem:[%s2152_s1 + $0x20] sm:$0xff] (!%p192_p10)   ;;  %v1701_v7 = vld [vmem:[%s2152_s1 + $0x28] sm:$0xff] (!%p192_p10)  }
  0x10   : > { %1544 = vmatpush3.bf16.msra.mxu0 (!%p192_p10), %v1696_v0  ;;  %1631 = vmatpush3.bf16.msra.mxu1 (!%p192_p10), %v1696_v0  ;;  %v1702_v8 = vld [vmem:[%s2152_s1 + $0x30] sm:$0xff] (!%p192_p10)   ;;  %v1703_v9 = vld [vmem:[%s2152_s1 + $0x38] sm:$0xff] (!%p192_p10)   ;;  %s1453_s4 = sshll.u32 (!%p192_p10), %s226_s30, 9  ;;  %v1962_v40 = vld [vmem:[%s2153_s2] ss:$0 sm:$0xff] (!%p192_p10)  ;;  %s1502_s8 = sshll.u32 (!%p192_p10), %s1806_s15, 13 }
  0x11   : > { %1545 = vmatprep.subr.bf16.mxu0 (!%p192_p10), %v1697_v1  ;;  %1624 = vmatprep.subr.bf16.mxu1 (!%p192_p10), %v1697_v1  ;;  %s1968_s7 = scalar_lea.vmem (!%p192_p10), [#allocation3], %s1453_s4  ;;  %s2091_s11 = scalar_lea.hbm (!%p192_p10), %s2154_s3, %s1502_s8 }
  0x12   : > { %s2105_s18 = scalar_lea.sflag (!%p192_p10), [#allocation4], %s226_s30  ;;  %s1816_s21 = smov (!%p192_p10), [#allocation3]  }
  0x13   : > { %s1740_s23 = sshll.u32 (!%p192_p10), %s1816_s21, 4  ;;  %s1741_s23 = int_to_ptr.vmem [resolvable:$false] %s1740_s23 }
  0x14   : > { %1546 = vmatpush3.bf16.msra.mxu0 (!%p192_p10), %v1697_v1  ;;  %1632 = vmatpush3.bf16.msra.mxu1 (!%p192_p10), %v1697_v1  ;;  %s1742_s26 = scalar_lea.vmem (!%p192_p10), %s1741_s23, 16384 }
  0x15   : > { %1547 = vmatprep.subr.bf16.mxu0 (!%p192_p10), %v1698_v2  ;;  %1625 = vmatprep.subr.bf16.mxu1 (!%p192_p10), %v1698_v2 }
  0x16   : > { %s2165_s28 = smov (!%p230_p11, %s1454_s28), 127 }
  0x17   : > { %s1455_s6 = sshll.u32 %s2165_s28, 2 }
  0x18   : > { %s1907_s9 = scalar_lea.vmem %s2151_s0, %s1455_s6  ;;  %1548 = vmatpush3.bf16.msra.mxu0 %v1698_v2  ;;  %1633 = vmatpush3.bf16.msra.mxu1 %v1698_v2 }
  0x19   : > { %v1704_v4 = vld [vmem:[%s1907_s9] sm:$0xff]   ;;  %1549 = vmatprep.subr.bf16.mxu0 %v1699_v3  ;;  %1626 = vmatprep.subr.bf16.mxu1 %v1699_v3  ;;  %v1706_v10 = vld [vmem:[%s1907_s9 + $0x8] sm:$0xff]   ;;  %v1708_v12 = vld [vmem:[%s1907_s9 + $0x10] sm:$0xff]  }
  0x1a   : > { %v1705_v5 = vld [vmem:[%s1907_s9 + $0x80] sm:$0xff]   ;;  %1559 = vmatprep.mubr.bf16.mxu0 %v1704_v4  ;;  %v1707_v11 = vld [vmem:[%s1907_s9 + $0x88] sm:$0xff]   ;;  %v1709_v13 = vld [vmem:[%s1907_s9 + $0x90] sm:$0xff]  }
  0x1b   : > { %1591 = vmatprep.mubr.bf16.mxu1 %v1705_v5  ;;  %v1710_v14 = vld [vmem:[%s1907_s9 + $0x18] sm:$0xff]   ;;  %v1712_v16 = vld [vmem:[%s1907_s9 + $0x20] sm:$0xff]   ;;  %v1714_v18 = vld [vmem:[%s1907_s9 + $0x28] sm:$0xff]  }
  0x1c   : > { %1550 = vmatpush3.bf16.msra.mxu0 %v1699_v3  ;;  %1634 = vmatpush3.bf16.msra.mxu1 %v1699_v3  ;;  %v1711_v15 = vld [vmem:[%s1907_s9 + $0x98] sm:$0xff]   ;;  %v1713_v17 = vld [vmem:[%s1907_s9 + $0xa0] sm:$0xff]   ;;  %v1715_v19 = vld [vmem:[%s1907_s9 + $0xa8] sm:$0xff]  }
  0x1d   : > { %1551 = vmatprep.subr.bf16.mxu0 %v1700_v6  ;;  %1627 = vmatprep.subr.bf16.mxu1 %v1700_v6  ;;  %v1716_v20 = vld [vmem:[%s1907_s9 + $0x30] sm:$0xff]   ;;  %v1718_v22 = vld [vmem:[%s1907_s9 + $0x38] sm:$0xff]   ;;  %v1720_v24 = vld [vmem:[%s1907_s9 + $0x40] sm:$0xff]  }
  0x1e   : > { %v1717_v21 = vld [vmem:[%s1907_s9 + $0xb0] sm:$0xff]   ;;  %v1719_v23 = vld [vmem:[%s1907_s9 + $0xb8] sm:$0xff]   ;;  %v1721_v25 = vld [vmem:[%s1907_s9 + $0xc0] sm:$0xff]  }
  0x1f   : > { %v1722_v26 = vld [vmem:[%s1907_s9 + $0x48] sm:$0xff]   ;;  %v1724_v28 = vld [vmem:[%s1907_s9 + $0x50] sm:$0xff]   ;;  %v1726_v30 = vld [vmem:[%s1907_s9 + $0x58] sm:$0xff]  }
  0x20   : > { %1552 = vmatpush3.bf16.msra.mxu0 %v1700_v6  ;;  %1635 = vmatpush3.bf16.msra.mxu1 %v1700_v6  ;;  %v1723_v27 = vld [vmem:[%s1907_s9 + $0xc8] sm:$0xff]   ;;  %v1725_v29 = vld [vmem:[%s1907_s9 + $0xd0] sm:$0xff]   ;;  %v1727_v31 = vld [vmem:[%s1907_s9 + $0xd8] sm:$0xff]  }
  0x21   : > { %1553 = vmatprep.subr.bf16.mxu0 %v1701_v7  ;;  %1628 = vmatprep.subr.bf16.mxu1 %v1701_v7  ;;  %v1728_v32 = vld [vmem:[%s1907_s9 + $0x60] sm:$0xff]   ;;  %v1730_v34 = vld [vmem:[%s1907_s9 + $0x68] sm:$0xff]   ;;  %v1732_v36 = vld [vmem:[%s1907_s9 + $0x70] sm:$0xff]  }
  0x22   : > { %v1729_v33 = vld [vmem:[%s1907_s9 + $0xe0] sm:$0xff]   ;;  %v1731_v35 = vld [vmem:[%s1907_s9 + $0xe8] sm:$0xff]   ;;  %v1733_v37 = vld [vmem:[%s1907_s9 + $0xf0] sm:$0xff]  }
  0x23   : > { %v1734_v38 = vld [vmem:[%s1907_s9 + $0x78] sm:$0xff]  }
  0x24   : > { %1554 = vmatpush3.bf16.msra.mxu0 %v1701_v7  ;;  %1636 = vmatpush3.bf16.msra.mxu1 %v1701_v7  ;;  %v1735_v39 = vld [vmem:[%s1907_s9 + $0xf8] sm:$0xff]   ;;  %s1338_s9 = sshll.u32 %s1968_s7, 4  ;;  %s2093_s9 = int_to_ptr.vmem [resolvable:$true] %s1338_s9 }
  0x25   : > { %1555 = vmatprep.subr.bf16.mxu0 %v1702_v8  ;;  %1629 = vmatprep.subr.bf16.mxu1 %v1702_v8  ;;  %s1736_s19 = scalar_lea.vmem %s2093_s9, 8192  ;;  %p1743_p1 = scmp.lt.s32.totalorder %s2093_s9, %s1741_s23 }
  0x26   : > { %p1737_p12 = scmp.ne.s32.totalorder %s2093_s9, %s1736_s19  ;;  %p1744_p2 = scmp.lt.s32.totalorder %s1742_s26, %s1736_s19 }
  0x28   : > { %1556 = vmatpush3.bf16.msra.mxu0 %v1702_v8  ;;  %1637 = vmatpush3.bf16.msra.mxu1 %v1702_v8  ;;  %p1738_p13 = pnand %p1737_p12, %p1879_p4  ;;  %p1745_p3 = por %p1744_p2, %p1743_p1 }
  0x29   : > { %1557 = vmatprep.subr.bf16.mxu0 %v1703_v9  ;;  %1630 = vmatprep.subr.bf16.mxu1 %v1703_v9 }
  0x2a   : > { %p1739_p0 = pneg %p1738_p13 }
  0x2c   : > { %1558 = vmatpush3.bf16.msra.mxu0 %v1703_v9  ;;  %1638 = vmatpush3.bf16.msra.mxu1 %v1703_v9  ;;  %p1746_p5 = pnand %p1745_p3, %p1739_p0 }
  0x2f   : > { %1560 = vmatmul.mubr.bf16.vlgmr.msra.gmra.mrb[0].mxu0 %v1706_v10  ;;  %1592 = vmatmul.mubr.bf16.vlgmr.msra.gmra.mrb[0].mxu1 %v1707_v11 }
  0x30   : > { %1563 = vmatprep.mubr.bf16.mxu0 %v1708_v12  ;;  %1595 = vmatprep.mubr.bf16.mxu1 %v1709_v13 }
  0x37   : > { %1564 = vmatmul.mubr.bf16.gmra.mrb[4].mxu0 %v1710_v14  ;;  %1596 = vmatmul.mubr.bf16.gmra.mrb[4].mxu1 %v1711_v15 }
  0x38   : > { %1567 = vmatprep.mubr.bf16.mxu0 %v1712_v16  ;;  %1599 = vmatprep.mubr.bf16.mxu1 %v1713_v17 }
  0x3f   : > { %1568 = vmatmul.mubr.bf16.gmra.mrb[8].mxu0 %v1714_v18  ;;  %1600 = vmatmul.mubr.bf16.gmra.mrb[8].mxu1 %v1715_v19 }
  0x40   : > { %1571 = vmatprep.mubr.bf16.mxu0 %v1716_v20  ;;  %1603 = vmatprep.mubr.bf16.mxu1 %v1717_v21 }
  0x47   : > { %1572 = vmatmul.mubr.bf16.gmra.mrb[12].mxu0 %v1718_v22  ;;  %1604 = vmatmul.mubr.bf16.gmra.mrb[12].mxu1 %v1719_v23 }
  0x48   : > { %1575 = vmatprep.mubr.bf16.mxu0 %v1720_v24  ;;  %1607 = vmatprep.mubr.bf16.mxu1 %v1721_v25 }
  0x4f   : > { %1576 = vmatmul.mubr.bf16.gmra.mrb[16].mxu0 %v1722_v26  ;;  %1608 = vmatmul.mubr.bf16.gmra.mrb[16].mxu1 %v1723_v27 }
  0x50   : > { %1579 = vmatprep.mubr.bf16.mxu0 %v1724_v28  ;;  %1611 = vmatprep.mubr.bf16.mxu1 %v1725_v29 }
  0x57   : > { %1580 = vmatmul.mubr.bf16.gmra.mrb[20].mxu0 %v1726_v30  ;;  %1612 = vmatmul.mubr.bf16.gmra.mrb[20].mxu1 %v1727_v31 }
  0x58   : > { %1583 = vmatprep.mubr.bf16.mxu0 %v1728_v32  ;;  %1615 = vmatprep.mubr.bf16.mxu1 %v1729_v33 }
  0x5f   : > { %1584 = vmatmul.mubr.bf16.gmra.mrb[24].mxu0 %v1730_v34  ;;  %1616 = vmatmul.mubr.bf16.gmra.mrb[24].mxu1 %v1731_v35 }
  0x60   : > { %1587 = vmatprep.mubr.bf16.mxu0 %v1732_v36  ;;  %1619 = vmatprep.mubr.bf16.mxu1 %v1733_v37 }
  0x67   : > { %1588 = vmatmul.mubr.bf16.gmra.mrb[28].mxu0 %v1734_v38  ;;  %1620 = vmatmul.mubr.bf16.gmra.mrb[28].mxu1 %v1735_v39 }
 0x102   : > { %v1561_v41 = vpop.f32.mrb[0].mxu0  ;;  %v1593_v42 = vpop.f32.mrb[0].mxu1 }
 0x103   : > { %v1197_v43 = vadd.f32 %v1561_v41, %v1962_v40  ;;  %v1229_v44 = vadd.f32 %v1593_v42, %v1962_v40  ;;  %v738_v45 = vpop.f32.mrb[1].mxu0  ;;  %v866_v46 = vpop.f32.mrb[1].mxu1 }
 0x104   : > { %v1195_v47 = vadd.f32 %v1962_v40, %v738_v45  ;;  %v1227_v48 = vadd.f32 %v1962_v40, %v866_v46  ;;  %v1562_v49 = vpop.f32.mrb[2].mxu0  ;;  %v1594_v50 = vpop.f32.mrb[2].mxu1 }
 0x105   : > { %1261 = vst [vmem:[%s1968_s7 + $0x10] sm:$0xff] %v1197_v43  ;;  %1293 = vst [vmem:[%s1968_s7 + $0x110] sm:$0xff] %v1229_v44  ;;  %v1198_v51 = vadd.f32 %v1562_v49, %v1962_v40  ;;  %v1230_v52 = vadd.f32 %v1594_v50, %v1962_v40  ;;  %v741_v53 = vpop.f32.mrb[3].mxu0  ;;  %v869_v54 = vpop.f32.mrb[3].mxu1 }
 0x106   : > { %1259 = vst [vmem:[%s1968_s7] sm:$0xff] %v1195_v47  ;;  %1291 = vst [vmem:[%s1968_s7 + $0x100] sm:$0xff] %v1227_v48  ;;  %v1196_v55 = vadd.f32 %v1962_v40, %v741_v53  ;;  %v1228_v56 = vadd.f32 %v1962_v40, %v869_v54 }
 0x107   : > { %1262 = vst [vmem:[%s1968_s7 + $0x18] sm:$0xff] %v1198_v51  ;;  %1294 = vst [vmem:[%s1968_s7 + $0x118] sm:$0xff] %v1230_v52 }
 0x108   : > { %1260 = vst [vmem:[%s1968_s7 + $0x8] sm:$0xff] %v1196_v55  ;;  %1292 = vst [vmem:[%s1968_s7 + $0x108] sm:$0xff] %v1228_v56 }
 0x10a   : > { %v1565_v57 = vpop.f32.mrb[4].mxu0  ;;  %v1597_v58 = vpop.f32.mrb[4].mxu1 }
 0x10b   : > { %v1201_v59 = vadd.f32 %v1565_v57, %v1962_v40  ;;  %v1233_v60 = vadd.f32 %v1597_v58, %v1962_v40  ;;  %v754_v61 = vpop.f32.mrb[5].mxu0  ;;  %v882_v62 = vpop.f32.mrb[5].mxu1 }
 0x10c   : > { %v1199_v63 = vadd.f32 %v1962_v40, %v754_v61  ;;  %v1231_v0 = vadd.f32 %v1962_v40, %v882_v62  ;;  %v1566_v1 = vpop.f32.mrb[6].mxu0  ;;  %v1598_v2 = vpop.f32.mrb[6].mxu1 }
 0x10d   : > { %1265 = vst [vmem:[%s1968_s7 + $0x30] sm:$0xff] %v1201_v59  ;;  %1297 = vst [vmem:[%s1968_s7 + $0x130] sm:$0xff] %v1233_v60  ;;  %v1202_v3 = vadd.f32 %v1566_v1, %v1962_v40  ;;  %v1234_v4 = vadd.f32 %v1598_v2, %v1962_v40  ;;  %v757_v5 = vpop.f32.mrb[7].mxu0  ;;  %v885_v6 = vpop.f32.mrb[7].mxu1 }
 0x10e   : > { %1263 = vst [vmem:[%s1968_s7 + $0x20] sm:$0xff] %v1199_v63  ;;  %1295 = vst [vmem:[%s1968_s7 + $0x120] sm:$0xff] %v1231_v0  ;;  %v1200_v7 = vadd.f32 %v1962_v40, %v757_v5  ;;  %v1232_v8 = vadd.f32 %v1962_v40, %v885_v6 }
 0x10f   : > { %1266 = vst [vmem:[%s1968_s7 + $0x38] sm:$0xff] %v1202_v3  ;;  %1298 = vst [vmem:[%s1968_s7 + $0x138] sm:$0xff] %v1234_v4 }
 0x110   : > { %1264 = vst [vmem:[%s1968_s7 + $0x28] sm:$0xff] %v1200_v7  ;;  %1296 = vst [vmem:[%s1968_s7 + $0x128] sm:$0xff] %v1232_v8 }
 0x112   : > { %v1569_v9 = vpop.f32.mrb[8].mxu0  ;;  %v1601_v10 = vpop.f32.mrb[8].mxu1 }
 0x113   : > { %v1205_v11 = vadd.f32 %v1569_v9, %v1962_v40  ;;  %v1237_v12 = vadd.f32 %v1601_v10, %v1962_v40  ;;  %v770_v13 = vpop.f32.mrb[9].mxu0  ;;  %v898_v14 = vpop.f32.mrb[9].mxu1 }
 0x114   : > { %v1203_v15 = vadd.f32 %v1962_v40, %v770_v13  ;;  %v1235_v16 = vadd.f32 %v1962_v40, %v898_v14  ;;  %v1570_v17 = vpop.f32.mrb[10].mxu0  ;;  %v1602_v18 = vpop.f32.mrb[10].mxu1 }
 0x115   : > { %1269 = vst [vmem:[%s1968_s7 + $0x50] sm:$0xff] %v1205_v11  ;;  %1301 = vst [vmem:[%s1968_s7 + $0x150] sm:$0xff] %v1237_v12  ;;  %v1206_v19 = vadd.f32 %v1570_v17, %v1962_v40  ;;  %v1238_v20 = vadd.f32 %v1602_v18, %v1962_v40  ;;  %v773_v21 = vpop.f32.mrb[11].mxu0  ;;  %v901_v22 = vpop.f32.mrb[11].mxu1 }
 0x116   : > { %1267 = vst [vmem:[%s1968_s7 + $0x40] sm:$0xff] %v1203_v15  ;;  %1299 = vst [vmem:[%s1968_s7 + $0x140] sm:$0xff] %v1235_v16  ;;  %v1204_v23 = vadd.f32 %v1962_v40, %v773_v21  ;;  %v1236_v24 = vadd.f32 %v1962_v40, %v901_v22 }
 0x117   : > { %1270 = vst [vmem:[%s1968_s7 + $0x58] sm:$0xff] %v1206_v19  ;;  %1302 = vst [vmem:[%s1968_s7 + $0x158] sm:$0xff] %v1238_v20 }
 0x118   : > { %1268 = vst [vmem:[%s1968_s7 + $0x48] sm:$0xff] %v1204_v23  ;;  %1300 = vst [vmem:[%s1968_s7 + $0x148] sm:$0xff] %v1236_v24 }
 0x11a   : > { %v1573_v25 = vpop.f32.mrb[12].mxu0  ;;  %v1605_v26 = vpop.f32.mrb[12].mxu1 }
 0x11b   : > { %v1209_v27 = vadd.f32 %v1573_v25, %v1962_v40  ;;  %v1241_v28 = vadd.f32 %v1605_v26, %v1962_v40  ;;  %v786_v29 = vpop.f32.mrb[13].mxu0  ;;  %v914_v30 = vpop.f32.mrb[13].mxu1 }
 0x11c   : > { %v1207_v31 = vadd.f32 %v1962_v40, %v786_v29  ;;  %v1239_v32 = vadd.f32 %v1962_v40, %v914_v30  ;;  %v1574_v33 = vpop.f32.mrb[14].mxu0  ;;  %v1606_v34 = vpop.f32.mrb[14].mxu1 }
 0x11d   : > { %1273 = vst [vmem:[%s1968_s7 + $0x70] sm:$0xff] %v1209_v27  ;;  %1305 = vst [vmem:[%s1968_s7 + $0x170] sm:$0xff] %v1241_v28  ;;  %v1210_v35 = vadd.f32 %v1574_v33, %v1962_v40  ;;  %v1242_v36 = vadd.f32 %v1606_v34, %v1962_v40  ;;  %v789_v37 = vpop.f32.mrb[15].mxu0  ;;  %v917_v38 = vpop.f32.mrb[15].mxu1 }
 0x11e   : > { %1271 = vst [vmem:[%s1968_s7 + $0x60] sm:$0xff] %v1207_v31  ;;  %1303 = vst [vmem:[%s1968_s7 + $0x160] sm:$0xff] %v1239_v32  ;;  %v1208_v39 = vadd.f32 %v1962_v40, %v789_v37  ;;  %v1240_v41 = vadd.f32 %v1962_v40, %v917_v38 }
 0x11f   : > { %1274 = vst [vmem:[%s1968_s7 + $0x78] sm:$0xff] %v1210_v35  ;;  %1306 = vst [vmem:[%s1968_s7 + $0x178] sm:$0xff] %v1242_v36 }
 0x120   : > { %1272 = vst [vmem:[%s1968_s7 + $0x68] sm:$0xff] %v1208_v39  ;;  %1304 = vst [vmem:[%s1968_s7 + $0x168] sm:$0xff] %v1240_v41 }
 0x122   : > { %v1577_v42 = vpop.f32.mrb[16].mxu0  ;;  %v1609_v43 = vpop.f32.mrb[16].mxu1 }
 0x123   : > { %v1213_v44 = vadd.f32 %v1577_v42, %v1962_v40  ;;  %v1245_v45 = vadd.f32 %v1609_v43, %v1962_v40  ;;  %v802_v46 = vpop.f32.mrb[17].mxu0  ;;  %v930_v47 = vpop.f32.mrb[17].mxu1 }
 0x124   : > { %v1211_v48 = vadd.f32 %v1962_v40, %v802_v46  ;;  %v1243_v49 = vadd.f32 %v1962_v40, %v930_v47  ;;  %v1578_v50 = vpop.f32.mrb[18].mxu0  ;;  %v1610_v51 = vpop.f32.mrb[18].mxu1 }
 0x125   : > { %1277 = vst [vmem:[%s1968_s7 + $0x90] sm:$0xff] %v1213_v44  ;;  %1309 = vst [vmem:[%s1968_s7 + $0x190] sm:$0xff] %v1245_v45  ;;  %v1214_v52 = vadd.f32 %v1578_v50, %v1962_v40  ;;  %v1246_v53 = vadd.f32 %v1610_v51, %v1962_v40  ;;  %v805_v54 = vpop.f32.mrb[19].mxu0  ;;  %v933_v55 = vpop.f32.mrb[19].mxu1 }
 0x126   : > { %1275 = vst [vmem:[%s1968_s7 + $0x80] sm:$0xff] %v1211_v48  ;;  %1307 = vst [vmem:[%s1968_s7 + $0x180] sm:$0xff] %v1243_v49  ;;  %v1212_v56 = vadd.f32 %v1962_v40, %v805_v54  ;;  %v1244_v57 = vadd.f32 %v1962_v40, %v933_v55 }
 0x127   : > { %1278 = vst [vmem:[%s1968_s7 + $0x98] sm:$0xff] %v1214_v52  ;;  %1310 = vst [vmem:[%s1968_s7 + $0x198] sm:$0xff] %v1246_v53 }
 0x128   : > { %1276 = vst [vmem:[%s1968_s7 + $0x88] sm:$0xff] %v1212_v56  ;;  %1308 = vst [vmem:[%s1968_s7 + $0x188] sm:$0xff] %v1244_v57 }
 0x12a   : > { %v1581_v58 = vpop.f32.mrb[20].mxu0  ;;  %v1613_v59 = vpop.f32.mrb[20].mxu1 }
 0x12b   : > { %v1217_v60 = vadd.f32 %v1581_v58, %v1962_v40  ;;  %v1249_v61 = vadd.f32 %v1613_v59, %v1962_v40  ;;  %v818_v62 = vpop.f32.mrb[21].mxu0  ;;  %v946_v63 = vpop.f32.mrb[21].mxu1 }
 0x12c   : > { %v1215_v0 = vadd.f32 %v1962_v40, %v818_v62  ;;  %v1247_v1 = vadd.f32 %v1962_v40, %v946_v63  ;;  %v1582_v2 = vpop.f32.mrb[22].mxu0  ;;  %v1614_v3 = vpop.f32.mrb[22].mxu1 }
 0x12d   : > { %1281 = vst [vmem:[%s1968_s7 + $0xb0] sm:$0xff] %v1217_v60  ;;  %1313 = vst [vmem:[%s1968_s7 + $0x1b0] sm:$0xff] %v1249_v61  ;;  %v1218_v4 = vadd.f32 %v1582_v2, %v1962_v40  ;;  %v1250_v5 = vadd.f32 %v1614_v3, %v1962_v40  ;;  %v821_v6 = vpop.f32.mrb[23].mxu0  ;;  %v949_v7 = vpop.f32.mrb[23].mxu1 }
 0x12e   : > { %1279 = vst [vmem:[%s1968_s7 + $0xa0] sm:$0xff] %v1215_v0  ;;  %1311 = vst [vmem:[%s1968_s7 + $0x1a0] sm:$0xff] %v1247_v1  ;;  %v1216_v8 = vadd.f32 %v1962_v40, %v821_v6  ;;  %v1248_v9 = vadd.f32 %v1962_v40, %v949_v7 }
 0x12f   : > { %1282 = vst [vmem:[%s1968_s7 + $0xb8] sm:$0xff] %v1218_v4  ;;  %1314 = vst [vmem:[%s1968_s7 + $0x1b8] sm:$0xff] %v1250_v5 }
 0x130   : > { %1280 = vst [vmem:[%s1968_s7 + $0xa8] sm:$0xff] %v1216_v8  ;;  %1312 = vst [vmem:[%s1968_s7 + $0x1a8] sm:$0xff] %v1248_v9 }
 0x132   : > { %v1585_v10 = vpop.f32.mrb[24].mxu0  ;;  %v1617_v11 = vpop.f32.mrb[24].mxu1 }
 0x133   : > { %v1221_v12 = vadd.f32 %v1585_v10, %v1962_v40  ;;  %v1253_v13 = vadd.f32 %v1617_v11, %v1962_v40  ;;  %v834_v14 = vpop.f32.mrb[25].mxu0  ;;  %v962_v15 = vpop.f32.mrb[25].mxu1 }
 0x134   : > { %v1219_v16 = vadd.f32 %v1962_v40, %v834_v14  ;;  %v1251_v17 = vadd.f32 %v1962_v40, %v962_v15  ;;  %v1586_v18 = vpop.f32.mrb[26].mxu0  ;;  %v1618_v19 = vpop.f32.mrb[26].mxu1 }
 0x135   : > { %1285 = vst [vmem:[%s1968_s7 + $0xd0] sm:$0xff] %v1221_v12  ;;  %1317 = vst [vmem:[%s1968_s7 + $0x1d0] sm:$0xff] %v1253_v13  ;;  %v1222_v20 = vadd.f32 %v1586_v18, %v1962_v40  ;;  %v1254_v21 = vadd.f32 %v1618_v19, %v1962_v40  ;;  %v837_v22 = vpop.f32.mrb[27].mxu0  ;;  %v965_v23 = vpop.f32.mrb[27].mxu1 }
 0x136   : > { %1283 = vst [vmem:[%s1968_s7 + $0xc0] sm:$0xff] %v1219_v16  ;;  %1315 = vst [vmem:[%s1968_s7 + $0x1c0] sm:$0xff] %v1251_v17  ;;  %v1220_v24 = vadd.f32 %v1962_v40, %v837_v22  ;;  %v1252_v25 = vadd.f32 %v1962_v40, %v965_v23 }
 0x137   : > { %1286 = vst [vmem:[%s1968_s7 + $0xd8] sm:$0xff] %v1222_v20  ;;  %1318 = vst [vmem:[%s1968_s7 + $0x1d8] sm:$0xff] %v1254_v21 }
 0x138   : > { %1284 = vst [vmem:[%s1968_s7 + $0xc8] sm:$0xff] %v1220_v24  ;;  %1316 = vst [vmem:[%s1968_s7 + $0x1c8] sm:$0xff] %v1252_v25 }
 0x13a   : > { %v1589_v26 = vpop.f32.mrb[28].mxu0  ;;  %v1621_v27 = vpop.f32.mrb[28].mxu1 }
 0x13b   : > { %v1225_v28 = vadd.f32 %v1589_v26, %v1962_v40  ;;  %v1257_v29 = vadd.f32 %v1621_v27, %v1962_v40  ;;  %v850_v30 = vpop.f32.mrb[29].mxu0  ;;  %v978_v31 = vpop.f32.mrb[29].mxu1 }
 0x13c   : > { %v1223_v32 = vadd.f32 %v1962_v40, %v850_v30  ;;  %v1255_v33 = vadd.f32 %v1962_v40, %v978_v31  ;;  %v1590_v34 = vpop.f32.mrb[30].mxu0  ;;  %v1622_v35 = vpop.f32.mrb[30].mxu1 }
 0x13d   : > { %1289 = vst [vmem:[%s1968_s7 + $0xf0] sm:$0xff] %v1225_v28  ;;  %1321 = vst [vmem:[%s1968_s7 + $0x1f0] sm:$0xff] %v1257_v29  ;;  %v1226_v36 = vadd.f32 %v1590_v34, %v1962_v40  ;;  %v1258_v37 = vadd.f32 %v1622_v35, %v1962_v40  ;;  %v853_v38 = vpop.f32.mrb[31].mxu0  ;;  %v981_v39 = vpop.f32.mrb[31].mxu1 }
 0x13e   : > { %1287 = vst [vmem:[%s1968_s7 + $0xe0] sm:$0xff] %v1223_v32  ;;  %1319 = vst [vmem:[%s1968_s7 + $0x1e0] sm:$0xff] %v1255_v33  ;;  %v1224_v41 = vadd.f32 %v1962_v40, %v853_v38  ;;  %v1256_v42 = vadd.f32 %v1962_v40, %v981_v39 }
 0x13f   : > { %1290 = vst [vmem:[%s1968_s7 + $0xf8] sm:$0xff] %v1226_v36  ;;  %1322 = vst [vmem:[%s1968_s7 + $0x1f8] sm:$0xff] %v1258_v37 }
 0x140   : > { %1288 = vst [vmem:[%s1968_s7 + $0xe8] sm:$0xff] %v1224_v41  ;;  %1320 = vst [vmem:[%s1968_s7 + $0x1e8] sm:$0xff] %v1256_v42 }
 0x141   : > { %1749 = shalt.err (!%p1746_p5)
}
 0x142   : > { %s1750_s27 = scalar_lea.hbm %s2091_s11, 8192  ;;  %s1754_s30 = scalar_lea.hbm %s2154_s3, 16384 }
 0x143   : > { %p1751_p6 = scmp.ne.s32.totalorder %s2091_s11, %s1750_s27  ;;  %p1755_p10 = scmp.lt.u32.totalorder %s2091_s11, %s2154_s3 }
 0x144   : > { %p1756_p11 = scmp.lt.u32.totalorder %s1754_s30, %s1750_s27  ;;  %p1758_p13 = scmp.lt.u32.totalorder %s1750_s27, %s2091_s11 }
 0x145   : > { %p1752_p7 = pnand %p1751_p6, %p1879_p4 }
 0x146   : > { %p1757_p12 = por %p1756_p11, %p1755_p10 }
 0x147   : > { %p1753_p9 = pneg %p1752_p7 }
 0x148   : > { %p1759_p0 = por %p1758_p13, %p1757_p12 }
 0x14a   : > { %p1760_p1 = pnand %p1759_p0, %p1753_p9 }
 0x14c   : > { %1763 = shalt.err (!%p1760_p1)
}
 0x14d   : > { %s1817_s6 = smov 128   ;;  %s1818_s7 = smov 8  }
 0x14e   : > { %1639 = dma.vmem_to_hbm [thread:$0]  (%p1879_p4), %s2093_s9, 8192, %s2091_s11, %s2105_s18, %s1817_s6, %s1817_s6, %s1818_s7  }
 0x14f PF: > { %p1645_p2 = scmp.ge.s32.totalorder %s1814_s17, 2  ;;  %s1353_s8 = sand.u32 1, %s1794_s12  }
 0x150   : > { %s1354_s15 = scalar_lea.sflag [#allocation4], %s1353_s8 }
 0x151   : > { %p1642_p3 = pnand %p1645_p2, %p1886_p8 }
 0x153   : > { %1789 = dma.done.wait (!%p1642_p3), %s1354_s15, 8192  }
 0x154   : > { %1791 = vsyncadd (!%p1642_p3), %s1354_s15, 4294959104  ;;  %s16_s17 = sadd.s32 1, %s1814_s17   ;;  %s2157_s12 = smov %s1798_s13 }
 0x155   : > { %p13_p5 = scmp.ge.s32.totalorder %s16_s17, 4   ;;  %s2158_s13 = smov %s1802_s14 }
 0x156   : > { %s2159_s14 = smov %s1892_s25  ;;  %s2160_s15 = smov %s1810_s16 }
 0x157   : > { %s2161_s16 = smov %s2163_s20  ;;  %15 = sbr.rel (!%p13_p5) target bundleno = 4 (0x4), region = 81 }
 0x15e   :  { %1359 = vsyncpa [#allocation4], 1 }
 0x15f   :  { %1361 = vsyncpa [#allocation4 + $0x1], 1 }

</bundles_post_ra>
